<compile_context>
chip_gen: v6e
topology: v6e:2x2x1
jax: 0.10.0
libtpu: 0.0.40
codegen_flags: <defaults>
</compile_context>

<pallas_src>
from functools import partial

import jax
import jax.numpy as jnp
from jax.experimental import pallas as pl
from jax.experimental.pallas import tpu as pltpu

LOGD_LANES = 128  # lane-dense logd output slab; sliced back to (B,) in wrapper


def stacknf_kernel(u_ref, ws_ref, wt_ref, bs_ref, bt_ref, mu_ref, std_ref,
                   x_ref, logd_ref, *, num_layers):
    """Fused forward pass of the whole flow stack for one batch tile.

    u_ref   : (TB, D)        input samples (batch tile)
    ws_ref  : (L, D/2, D/2)  coupling-net weights, log-scale columns (bf16)
    wt_ref  : (L, D/2, D/2)  coupling-net weights, shift columns     (bf16)
    bs_ref  : (L, D/2)       biases, log-scale part
    bt_ref  : (L, D/2)       biases, shift part
    mu_ref  : (1, D)         output shift
    std_ref : (1, D)         output scale (positive)
    x_ref   : (TB, D)        transformed output
    logd_ref: (TB, 128)      per-sample log|det J| (value broadcast over lanes)
    """
    x = u_ref[...].astype(jnp.float32)
    half = ws_ref.shape[1]
    cond = x[:, :half]                       # split once; halves stay separate
    target = x[:, half:]
    logd_acc = jnp.zeros_like(cond)          # (TB, half) per-lane logd accumulator

    # Statically unrolled over layers (small L).  For long stacks, switch to
    # lax.fori_loop over layer *pairs* (dynamic ws_ref[l] indexing) to keep
    # live ranges bounded -- the even/odd role swap still needs no data motion.
    for l in range(num_layers):
        cond_b = cond.astype(jnp.bfloat16)   # bf16 MXU inputs, f32 accumulate
        s = jnp.tanh(
            jnp.dot(cond_b, ws_ref[l], preferred_element_type=jnp.float32)
            + bs_ref[l:l + 1, :])
        t = (jnp.dot(cond_b, wt_ref[l], preferred_element_type=jnp.float32)
             + bt_ref[l:l + 1, :])
        y = target * jnp.exp(s) + t          # affine coupling
        logd_acc = logd_acc + s              # deferred reduction: VPU add only
        cond, target = y, cond               # zero-cost role swap (unrolled)

    # Map the swapped variables back to (lo, hi) halves.
    if num_layers % 2 == 0:
        x_lo, x_hi = cond, target
    else:
        x_lo, x_hi = target, cond

    # Assemble the full row exactly once, in the epilogue.
    x_full = jnp.concatenate([x_lo, x_hi], axis=-1)
    x_ref[...] = (x_full * std_ref[...] + mu_ref[...]).astype(x_ref.dtype)

    # Single cross-lane reduction for the whole stack, lane-dense store.
    logd = jnp.sum(logd_acc, axis=-1, keepdims=True)        # (TB, 1)
    logd_ref[...] = jnp.broadcast_to(logd, logd_ref.shape)  # (TB, 128)


def _round_up(v, m):
    return (v + m - 1) // m * m


def stacknf_forward(u, W, b, mu, std, *, tb_max=256):
    """StackNF.forward with affine-coupling layers, fused in one pallas_call."""
    B, D = u.shape
    L, Dh, D2 = W.shape
    assert D2 == D and 2 * Dh == D

    # Batch tile: multiple of 8 sublanes, capped so large batches pipeline and
    # shard across cores; pad the batch so the grid divides evenly.
    TB = min(tb_max, _round_up(B, 8))
    Bp = _round_up(B, TB)
    u_p = u if Bp == B else jnp.pad(u, ((0, Bp - B), (0, 0)))

    # Layout plumbing in the wrapper (no in-kernel lane slicing):
    # split each coupling net into scale / shift column blocks, keep bf16.
    W_s = W[:, :, :Dh].astype(jnp.bfloat16)
    W_t = W[:, :, Dh:].astype(jnp.bfloat16)
    b_s = b[:, :Dh].astype(jnp.float32)
    b_t = b[:, Dh:].astype(jnp.float32)
    mu_r = mu.reshape(1, D).astype(jnp.float32)
    std_r = std.reshape(1, D).astype(jnp.float32)

    kernel = partial(stacknf_kernel, num_layers=L)

    x_p, logd_p = pl.pallas_call(
        kernel,
        out_shape=(
            jax.ShapeDtypeStruct((Bp, D), jnp.float32),
            jax.ShapeDtypeStruct((Bp, LOGD_LANES), jnp.float32),
        ),
        grid_spec=pltpu.PrefetchScalarGridSpec(
            num_scalar_prefetch=0,
            grid=(Bp // TB,),
            in_specs=[
                pl.BlockSpec((TB, D), lambda i: (i, 0)),         # u: batch-tiled
                pl.BlockSpec((L, Dh, Dh), lambda i: (0, 0, 0)),  # W_s: resident
                pl.BlockSpec((L, Dh, Dh), lambda i: (0, 0, 0)),  # W_t: resident
                pl.BlockSpec((L, Dh), lambda i: (0, 0)),         # b_s: resident
                pl.BlockSpec((L, Dh), lambda i: (0, 0)),         # b_t: resident
                pl.BlockSpec((1, D), lambda i: (0, 0)),          # mu
                pl.BlockSpec((1, D), lambda i: (0, 0)),          # std
            ],
            out_specs=[
                pl.BlockSpec((TB, D), lambda i: (i, 0)),
                pl.BlockSpec((TB, LOGD_LANES), lambda i: (i, 0)),
            ],
        ),
        # Batch tiles are independent -> parallel axis (2 TCs on v7x).
        compiler_params=pltpu.CompilerParams(
            dimension_semantics=("parallel",)),
    )(u_p, W_s, W_t, b_s, b_t, mu_r, std_r)

    # Constant contribution of the output scaling, hoisted out of the kernel
    # so it is not recomputed on every batch tile.
    logd = logd_p[:B, 0] + jnp.sum(jnp.log(std))
    return x_p[:B], logd


def stacknf_reference(u, W, b, mu, std):
    """Plain-JAX reference mirroring StackNF.forward with the same coupling
    layers (bf16 matmul inputs, f32 accumulation, like the kernel)."""
    L, Dh, D = W.shape
    x = u.astype(jnp.float32)
    logd_sum = jnp.zeros((u.shape[0],), jnp.float32)
    for l in range(L):
        if l % 2 == 0:
            cond, target = x[:, :Dh], x[:, Dh:]
        else:
            cond, target = x[:, Dh:], x[:, :Dh]
        h = jnp.dot(cond.astype(jnp.bfloat16), W[l].astype(jnp.bfloat16),
                    preferred_element_type=jnp.float32) + b[l]
        s = jnp.tanh(h[:, :Dh])
        t = h[:, Dh:]
        y = target * jnp.exp(s) + t
        logd_sum = logd_sum + jnp.sum(s, axis=-1)
        x = jnp.concatenate([cond, y] if l % 2 == 0 else [y, cond], axis=-1)
    x = x * std + mu
    return x, logd_sum + jnp.sum(jnp.log(std))


if __name__ == "__main__":
    B, D, L = 8, 32, 6
    Dh = D // 2

    key = jax.random.PRNGKey(0)
    ku, kw, kb, kmu, kstd = jax.random.split(key, 5)

    u = jax.random.normal(ku, (B, D), dtype=jnp.float32)
    W = 0.1 * jax.random.normal(kw, (L, Dh, D), dtype=jnp.float32)
    b = 0.05 * jax.random.normal(kb, (L, D), dtype=jnp.float32)
    mu = 0.1 * jax.random.normal(kmu, (D,), dtype=jnp.float32)
    std = 0.5 + jnp.abs(jax.random.normal(kstd, (D,), dtype=jnp.float32))

    x_out, logd_out = stacknf_forward(u, W, b, mu, std)
    jax.block_until_ready((x_out, logd_out))

    x_ref, logd_ref = stacknf_reference(u, W, b, mu, std)
    assert jnp.allclose(x_out, x_ref, rtol=2e-3, atol=2e-3), "x mismatch"
    assert jnp.allclose(logd_out, logd_ref, rtol=2e-3, atol=2e-3), "logd mismatch"

    print("KERNEL_OK")
</pallas_src>

<mosaic_0001>
module attributes {stable_mosaic.version = 11 : i64} {
  func.func @stacknf_kernel(%arg0: i32, %arg1: memref<8x32xf32, #tpu.memory_space<vmem>>, %arg2: memref<6x16x16xbf16, #tpu.memory_space<vmem>>, %arg3: memref<6x16x16xbf16, #tpu.memory_space<vmem>>, %arg4: memref<6x16xf32, #tpu.memory_space<vmem>>, %arg5: memref<6x16xf32, #tpu.memory_space<vmem>>, %arg6: memref<1x32xf32, #tpu.memory_space<vmem>>, %arg7: memref<1x32xf32, #tpu.memory_space<vmem>>, %arg8: memref<8x32xf32, #tpu.memory_space<vmem>>, %arg9: memref<8x128xf32, #tpu.memory_space<vmem>>) attributes {dimension_semantics = [#tpu.dimension_semantics<parallel>], iteration_bounds = array<i64: 1>, scalar_prefetch = 0 : i64, scratch_operands = 0 : i64, tpu.core_type = #tpu.core_type<tc>, window_params = [{transform_indices = @transform_0, window_bounds = array<i64: 8, 32>}, {pipeline_mode = #tpu.pipeline_mode<synchronous>, transform_indices = @transform_1, window_bounds = array<i64: 6, 16, 16>}, {pipeline_mode = #tpu.pipeline_mode<synchronous>, transform_indices = @transform_2, window_bounds = array<i64: 6, 16, 16>}, {pipeline_mode = #tpu.pipeline_mode<synchronous>, transform_indices = @transform_3, window_bounds = array<i64: 6, 16>}, {pipeline_mode = #tpu.pipeline_mode<synchronous>, transform_indices = @transform_4, window_bounds = array<i64: 6, 16>}, {pipeline_mode = #tpu.pipeline_mode<synchronous>, transform_indices = @transform_5, window_bounds = array<i64: 1, 32>}, {pipeline_mode = #tpu.pipeline_mode<synchronous>, transform_indices = @transform_6, window_bounds = array<i64: 1, 32>}, {transform_indices = @transform_7, window_bounds = array<i64: 8, 32>}, {transform_indices = @transform_8, window_bounds = array<i64: 8, 128>}]} {
    %c0 = arith.constant 0 : index
    %c0_0 = arith.constant 0 : index
    %0 = vector.load %arg1[%c0, %c0_0] : memref<8x32xf32, #tpu.memory_space<vmem>>, vector<8x32xf32>
    %1 = vector.extract_strided_slice %0 {offsets = [0, 0], sizes = [8, 16], strides = [1, 1]} : vector<8x32xf32> to vector<8x16xf32>
    %2 = vector.extract_strided_slice %0 {offsets = [0, 16], sizes = [8, 16], strides = [1, 1]} : vector<8x32xf32> to vector<8x16xf32>
    %cst = arith.constant 0.000000e+00 : f32
    %3 = vector.broadcast %cst : f32 to vector<8x16xf32>
    %4 = arith.truncf %1 : vector<8x16xf32> to vector<8x16xbf16>
    %c0_1 = arith.constant 0 : index
    %c0_2 = arith.constant 0 : index
    %c0_3 = arith.constant 0 : index
    %5 = vector.load %arg2[%c0_1, %c0_2, %c0_3] : memref<6x16x16xbf16, #tpu.memory_space<vmem>>, vector<1x16x16xbf16>
    %6 = vector.shape_cast %5 : vector<1x16x16xbf16> to vector<16x16xbf16>
    %cst_4 = arith.constant dense<0.000000e+00> : vector<8x16xf32>
    %7 = tpu.matmul %4, %6, %cst_4 {dimension_numbers = #tpu.dot_dimension_numbers<[1], [0], [0], [1], [0, 0, 1, 1], [], []>} : vector<8x16xbf16>, vector<16x16xbf16>, vector<8x16xf32> -> vector<8x16xf32>
    %c0_5 = arith.constant 0 : index
    %c0_6 = arith.constant 0 : index
    %8 = vector.load %arg4[%c0_5, %c0_6] : memref<6x16xf32, #tpu.memory_space<vmem>>, vector<1x16xf32>
    %9 = vector.broadcast %8 : vector<1x16xf32> to vector<8x16xf32>
    %10 = arith.addf %7, %9 : vector<8x16xf32>
    %11 = math.tanh %10 : vector<8x16xf32>
    %c0_7 = arith.constant 0 : index
    %c0_8 = arith.constant 0 : index
    %c0_9 = arith.constant 0 : index
    %12 = vector.load %arg3[%c0_7, %c0_8, %c0_9] : memref<6x16x16xbf16, #tpu.memory_space<vmem>>, vector<1x16x16xbf16>
    %13 = vector.shape_cast %12 : vector<1x16x16xbf16> to vector<16x16xbf16>
    %cst_10 = arith.constant dense<0.000000e+00> : vector<8x16xf32>
    %14 = tpu.matmul %4, %13, %cst_10 {dimension_numbers = #tpu.dot_dimension_numbers<[1], [0], [0], [1], [0, 0, 1, 1], [], []>} : vector<8x16xbf16>, vector<16x16xbf16>, vector<8x16xf32> -> vector<8x16xf32>
    %c0_11 = arith.constant 0 : index
    %c0_12 = arith.constant 0 : index
    %15 = vector.load %arg5[%c0_11, %c0_12] : memref<6x16xf32, #tpu.memory_space<vmem>>, vector<1x16xf32>
    %16 = vector.broadcast %15 : vector<1x16xf32> to vector<8x16xf32>
    %17 = arith.addf %14, %16 : vector<8x16xf32>
    %18 = math.exp %11 : vector<8x16xf32>
    %19 = arith.mulf %2, %18 : vector<8x16xf32>
    %20 = arith.addf %19, %17 : vector<8x16xf32>
    %21 = arith.addf %3, %11 : vector<8x16xf32>
    %22 = arith.truncf %20 : vector<8x16xf32> to vector<8x16xbf16>
    %c1 = arith.constant 1 : index
    %c0_13 = arith.constant 0 : index
    %c0_14 = arith.constant 0 : index
    %23 = vector.load %arg2[%c1, %c0_13, %c0_14] : memref<6x16x16xbf16, #tpu.memory_space<vmem>>, vector<1x16x16xbf16>
    %24 = vector.shape_cast %23 : vector<1x16x16xbf16> to vector<16x16xbf16>
    %cst_15 = arith.constant dense<0.000000e+00> : vector<8x16xf32>
    %25 = tpu.matmul %22, %24, %cst_15 {dimension_numbers = #tpu.dot_dimension_numbers<[1], [0], [0], [1], [0, 0, 1, 1], [], []>} : vector<8x16xbf16>, vector<16x16xbf16>, vector<8x16xf32> -> vector<8x16xf32>
    %c1_16 = arith.constant 1 : index
    %c0_17 = arith.constant 0 : index
    %26 = vector.load %arg4[%c1_16, %c0_17] : memref<6x16xf32, #tpu.memory_space<vmem>>, vector<1x16xf32>
    %27 = vector.broadcast %26 : vector<1x16xf32> to vector<8x16xf32>
    %28 = arith.addf %25, %27 : vector<8x16xf32>
    %29 = math.tanh %28 : vector<8x16xf32>
    %c1_18 = arith.constant 1 : index
    %c0_19 = arith.constant 0 : index
    %c0_20 = arith.constant 0 : index
    %30 = vector.load %arg3[%c1_18, %c0_19, %c0_20] : memref<6x16x16xbf16, #tpu.memory_space<vmem>>, vector<1x16x16xbf16>
    %31 = vector.shape_cast %30 : vector<1x16x16xbf16> to vector<16x16xbf16>
    %cst_21 = arith.constant dense<0.000000e+00> : vector<8x16xf32>
    %32 = tpu.matmul %22, %31, %cst_21 {dimension_numbers = #tpu.dot_dimension_numbers<[1], [0], [0], [1], [0, 0, 1, 1], [], []>} : vector<8x16xbf16>, vector<16x16xbf16>, vector<8x16xf32> -> vector<8x16xf32>
    %c1_22 = arith.constant 1 : index
    %c0_23 = arith.constant 0 : index
    %33 = vector.load %arg5[%c1_22, %c0_23] : memref<6x16xf32, #tpu.memory_space<vmem>>, vector<1x16xf32>
    %34 = vector.broadcast %33 : vector<1x16xf32> to vector<8x16xf32>
    %35 = arith.addf %32, %34 : vector<8x16xf32>
    %36 = math.exp %29 : vector<8x16xf32>
    %37 = arith.mulf %1, %36 : vector<8x16xf32>
    %38 = arith.addf %37, %35 : vector<8x16xf32>
    %39 = arith.addf %21, %29 : vector<8x16xf32>
    %40 = arith.truncf %38 : vector<8x16xf32> to vector<8x16xbf16>
    %c2 = arith.constant 2 : index
    %c0_24 = arith.constant 0 : index
    %c0_25 = arith.constant 0 : index
    %41 = vector.load %arg2[%c2, %c0_24, %c0_25] : memref<6x16x16xbf16, #tpu.memory_space<vmem>>, vector<1x16x16xbf16>
    %42 = vector.shape_cast %41 : vector<1x16x16xbf16> to vector<16x16xbf16>
    %cst_26 = arith.constant dense<0.000000e+00> : vector<8x16xf32>
    %43 = tpu.matmul %40, %42, %cst_26 {dimension_numbers = #tpu.dot_dimension_numbers<[1], [0], [0], [1], [0, 0, 1, 1], [], []>} : vector<8x16xbf16>, vector<16x16xbf16>, vector<8x16xf32> -> vector<8x16xf32>
    %c2_27 = arith.constant 2 : index
    %c0_28 = arith.constant 0 : index
    %44 = vector.load %arg4[%c2_27, %c0_28] : memref<6x16xf32, #tpu.memory_space<vmem>>, vector<1x16xf32>
    %45 = vector.broadcast %44 : vector<1x16xf32> to vector<8x16xf32>
    %46 = arith.addf %43, %45 : vector<8x16xf32>
    %47 = math.tanh %46 : vector<8x16xf32>
    %c2_29 = arith.constant 2 : index
    %c0_30 = arith.constant 0 : index
    %c0_31 = arith.constant 0 : index
    %48 = vector.load %arg3[%c2_29, %c0_30, %c0_31] : memref<6x16x16xbf16, #tpu.memory_space<vmem>>, vector<1x16x16xbf16>
    %49 = vector.shape_cast %48 : vector<1x16x16xbf16> to vector<16x16xbf16>
    %cst_32 = arith.constant dense<0.000000e+00> : vector<8x16xf32>
    %50 = tpu.matmul %40, %49, %cst_32 {dimension_numbers = #tpu.dot_dimension_numbers<[1], [0], [0], [1], [0, 0, 1, 1], [], []>} : vector<8x16xbf16>, vector<16x16xbf16>, vector<8x16xf32> -> vector<8x16xf32>
    %c2_33 = arith.constant 2 : index
    %c0_34 = arith.constant 0 : index
    %51 = vector.load %arg5[%c2_33, %c0_34] : memref<6x16xf32, #tpu.memory_space<vmem>>, vector<1x16xf32>
    %52 = vector.broadcast %51 : vector<1x16xf32> to vector<8x16xf32>
    %53 = arith.addf %50, %52 : vector<8x16xf32>
    %54 = math.exp %47 : vector<8x16xf32>
    %55 = arith.mulf %20, %54 : vector<8x16xf32>
    %56 = arith.addf %55, %53 : vector<8x16xf32>
    %57 = arith.addf %39, %47 : vector<8x16xf32>
    %58 = arith.truncf %56 : vector<8x16xf32> to vector<8x16xbf16>
    %c3 = arith.constant 3 : index
    %c0_35 = arith.constant 0 : index
    %c0_36 = arith.constant 0 : index
    %59 = vector.load %arg2[%c3, %c0_35, %c0_36] : memref<6x16x16xbf16, #tpu.memory_space<vmem>>, vector<1x16x16xbf16>
    %60 = vector.shape_cast %59 : vector<1x16x16xbf16> to vector<16x16xbf16>
    %cst_37 = arith.constant dense<0.000000e+00> : vector<8x16xf32>
    %61 = tpu.matmul %58, %60, %cst_37 {dimension_numbers = #tpu.dot_dimension_numbers<[1], [0], [0], [1], [0, 0, 1, 1], [], []>} : vector<8x16xbf16>, vector<16x16xbf16>, vector<8x16xf32> -> vector<8x16xf32>
    %c3_38 = arith.constant 3 : index
    %c0_39 = arith.constant 0 : index
    %62 = vector.load %arg4[%c3_38, %c0_39] : memref<6x16xf32, #tpu.memory_space<vmem>>, vector<1x16xf32>
    %63 = vector.broadcast %62 : vector<1x16xf32> to vector<8x16xf32>
    %64 = arith.addf %61, %63 : vector<8x16xf32>
    %65 = math.tanh %64 : vector<8x16xf32>
    %c3_40 = arith.constant 3 : index
    %c0_41 = arith.constant 0 : index
    %c0_42 = arith.constant 0 : index
    %66 = vector.load %arg3[%c3_40, %c0_41, %c0_42] : memref<6x16x16xbf16, #tpu.memory_space<vmem>>, vector<1x16x16xbf16>
    %67 = vector.shape_cast %66 : vector<1x16x16xbf16> to vector<16x16xbf16>
    %cst_43 = arith.constant dense<0.000000e+00> : vector<8x16xf32>
    %68 = tpu.matmul %58, %67, %cst_43 {dimension_numbers = #tpu.dot_dimension_numbers<[1], [0], [0], [1], [0, 0, 1, 1], [], []>} : vector<8x16xbf16>, vector<16x16xbf16>, vector<8x16xf32> -> vector<8x16xf32>
    %c3_44 = arith.constant 3 : index
    %c0_45 = arith.constant 0 : index
    %69 = vector.load %arg5[%c3_44, %c0_45] : memref<6x16xf32, #tpu.memory_space<vmem>>, vector<1x16xf32>
    %70 = vector.broadcast %69 : vector<1x16xf32> to vector<8x16xf32>
    %71 = arith.addf %68, %70 : vector<8x16xf32>
    %72 = math.exp %65 : vector<8x16xf32>
    %73 = arith.mulf %38, %72 : vector<8x16xf32>
    %74 = arith.addf %73, %71 : vector<8x16xf32>
    %75 = arith.addf %57, %65 : vector<8x16xf32>
    %76 = arith.truncf %74 : vector<8x16xf32> to vector<8x16xbf16>
    %c4 = arith.constant 4 : index
    %c0_46 = arith.constant 0 : index
    %c0_47 = arith.constant 0 : index
    %77 = vector.load %arg2[%c4, %c0_46, %c0_47] : memref<6x16x16xbf16, #tpu.memory_space<vmem>>, vector<1x16x16xbf16>
    %78 = vector.shape_cast %77 : vector<1x16x16xbf16> to vector<16x16xbf16>
    %cst_48 = arith.constant dense<0.000000e+00> : vector<8x16xf32>
    %79 = tpu.matmul %76, %78, %cst_48 {dimension_numbers = #tpu.dot_dimension_numbers<[1], [0], [0], [1], [0, 0, 1, 1], [], []>} : vector<8x16xbf16>, vector<16x16xbf16>, vector<8x16xf32> -> vector<8x16xf32>
    %c4_49 = arith.constant 4 : index
    %c0_50 = arith.constant 0 : index
    %80 = vector.load %arg4[%c4_49, %c0_50] : memref<6x16xf32, #tpu.memory_space<vmem>>, vector<1x16xf32>
    %81 = vector.broadcast %80 : vector<1x16xf32> to vector<8x16xf32>
    %82 = arith.addf %79, %81 : vector<8x16xf32>
    %83 = math.tanh %82 : vector<8x16xf32>
    %c4_51 = arith.constant 4 : index
    %c0_52 = arith.constant 0 : index
    %c0_53 = arith.constant 0 : index
    %84 = vector.load %arg3[%c4_51, %c0_52, %c0_53] : memref<6x16x16xbf16, #tpu.memory_space<vmem>>, vector<1x16x16xbf16>
    %85 = vector.shape_cast %84 : vector<1x16x16xbf16> to vector<16x16xbf16>
    %cst_54 = arith.constant dense<0.000000e+00> : vector<8x16xf32>
    %86 = tpu.matmul %76, %85, %cst_54 {dimension_numbers = #tpu.dot_dimension_numbers<[1], [0], [0], [1], [0, 0, 1, 1], [], []>} : vector<8x16xbf16>, vector<16x16xbf16>, vector<8x16xf32> -> vector<8x16xf32>
    %c4_55 = arith.constant 4 : index
    %c0_56 = arith.constant 0 : index
    %87 = vector.load %arg5[%c4_55, %c0_56] : memref<6x16xf32, #tpu.memory_space<vmem>>, vector<1x16xf32>
    %88 = vector.broadcast %87 : vector<1x16xf32> to vector<8x16xf32>
    %89 = arith.addf %86, %88 : vector<8x16xf32>
    %90 = math.exp %83 : vector<8x16xf32>
    %91 = arith.mulf %56, %90 : vector<8x16xf32>
    %92 = arith.addf %91, %89 : vector<8x16xf32>
    %93 = arith.addf %75, %83 : vector<8x16xf32>
    %94 = arith.truncf %92 : vector<8x16xf32> to vector<8x16xbf16>
    %c5 = arith.constant 5 : index
    %c0_57 = arith.constant 0 : index
    %c0_58 = arith.constant 0 : index
    %95 = vector.load %arg2[%c5, %c0_57, %c0_58] : memref<6x16x16xbf16, #tpu.memory_space<vmem>>, vector<1x16x16xbf16>
    %96 = vector.shape_cast %95 : vector<1x16x16xbf16> to vector<16x16xbf16>
    %cst_59 = arith.constant dense<0.000000e+00> : vector<8x16xf32>
    %97 = tpu.matmul %94, %96, %cst_59 {dimension_numbers = #tpu.dot_dimension_numbers<[1], [0], [0], [1], [0, 0, 1, 1], [], []>} : vector<8x16xbf16>, vector<16x16xbf16>, vector<8x16xf32> -> vector<8x16xf32>
    %c5_60 = arith.constant 5 : index
    %c0_61 = arith.constant 0 : index
    %98 = vector.load %arg4[%c5_60, %c0_61] : memref<6x16xf32, #tpu.memory_space<vmem>>, vector<1x16xf32>
    %99 = vector.broadcast %98 : vector<1x16xf32> to vector<8x16xf32>
    %100 = arith.addf %97, %99 : vector<8x16xf32>
    %101 = math.tanh %100 : vector<8x16xf32>
    %c5_62 = arith.constant 5 : index
    %c0_63 = arith.constant 0 : index
    %c0_64 = arith.constant 0 : index
    %102 = vector.load %arg3[%c5_62, %c0_63, %c0_64] : memref<6x16x16xbf16, #tpu.memory_space<vmem>>, vector<1x16x16xbf16>
    %103 = vector.shape_cast %102 : vector<1x16x16xbf16> to vector<16x16xbf16>
    %cst_65 = arith.constant dense<0.000000e+00> : vector<8x16xf32>
    %104 = tpu.matmul %94, %103, %cst_65 {dimension_numbers = #tpu.dot_dimension_numbers<[1], [0], [0], [1], [0, 0, 1, 1], [], []>} : vector<8x16xbf16>, vector<16x16xbf16>, vector<8x16xf32> -> vector<8x16xf32>
    %c5_66 = arith.constant 5 : index
    %c0_67 = arith.constant 0 : index
    %105 = vector.load %arg5[%c5_66, %c0_67] : memref<6x16xf32, #tpu.memory_space<vmem>>, vector<1x16xf32>
    %106 = vector.broadcast %105 : vector<1x16xf32> to vector<8x16xf32>
    %107 = arith.addf %104, %106 : vector<8x16xf32>
    %108 = math.exp %101 : vector<8x16xf32>
    %109 = arith.mulf %74, %108 : vector<8x16xf32>
    %110 = arith.addf %109, %107 : vector<8x16xf32>
    %111 = arith.addf %93, %101 : vector<8x16xf32>
    %112 = tpu.concatenate %110, %92 in 1 : vector<8x16xf32>, vector<8x16xf32> -> vector<8x32xf32>
    %c0_68 = arith.constant 0 : index
    %c0_69 = arith.constant 0 : index
    %113 = vector.load %arg7[%c0_68, %c0_69] : memref<1x32xf32, #tpu.memory_space<vmem>>, vector<1x32xf32>
    %114 = vector.broadcast %113 : vector<1x32xf32> to vector<8x32xf32>
    %115 = arith.mulf %112, %114 : vector<8x32xf32>
    %c0_70 = arith.constant 0 : index
    %c0_71 = arith.constant 0 : index
    %116 = vector.load %arg6[%c0_70, %c0_71] : memref<1x32xf32, #tpu.memory_space<vmem>>, vector<1x32xf32>
    %117 = vector.broadcast %116 : vector<1x32xf32> to vector<8x32xf32>
    %118 = arith.addf %115, %117 : vector<8x32xf32>
    %c0_72 = arith.constant 0 : index
    %c0_73 = arith.constant 0 : index
    %119 = vector.load %arg8[%c0_72, %c0_73] : memref<8x32xf32, #tpu.memory_space<vmem>>, vector<8x32xf32>
    tpu.vector_store %arg8[%c0_72, %c0_73], %118 {strides = array<i32>} : memref<8x32xf32, #tpu.memory_space<vmem>>, vector<8x32xf32>,
    %cst_74 = arith.constant dense<0.000000e+00> : vector<8xf32>
    %120 = vector.multi_reduction <add>, %111, %cst_74 [1] : vector<8x16xf32> to vector<8xf32>
    %121 = vector.shape_cast %120 : vector<8xf32> to vector<8x1xf32>
    %122 = vector.shape_cast %121 : vector<8x1xf32> to vector<8x1xf32>
    %123 = vector.broadcast %122 : vector<8x1xf32> to vector<8x128xf32>
    %c0_75 = arith.constant 0 : index
    %c0_76 = arith.constant 0 : index
    %124 = vector.load %arg9[%c0_75, %c0_76] : memref<8x128xf32, #tpu.memory_space<vmem>>, vector<8x128xf32>
    tpu.vector_store %arg9[%c0_75, %c0_76], %123 {strides = array<i32>} : memref<8x128xf32, #tpu.memory_space<vmem>>, vector<8x128xf32>,
    return
  }
  func.func @transform_0(%arg0: i32) -> (i32, i32) {
    %c0_i32 = arith.constant 0 : i32
    %c0_i32_0 = arith.constant 0 : i32
    return %arg0, %c0_i32 : i32, i32
  }
  func.func @transform_1(%arg0: i32) -> (i32, i32, i32) {
    %c0_i32 = arith.constant 0 : i32
    %c0_i32_0 = arith.constant 0 : i32
    %c0_i32_1 = arith.constant 0 : i32
    %c0_i32_2 = arith.constant 0 : i32
    return %c0_i32, %c0_i32_0, %c0_i32_1 : i32, i32, i32
  }
  func.func @transform_2(%arg0: i32) -> (i32, i32, i32) {
    %c0_i32 = arith.constant 0 : i32
    %c0_i32_0 = arith.constant 0 : i32
    %c0_i32_1 = arith.constant 0 : i32
    %c0_i32_2 = arith.constant 0 : i32
    return %c0_i32, %c0_i32_0, %c0_i32_1 : i32, i32, i32
  }
  func.func @transform_3(%arg0: i32) -> (i32, i32) {
    %c0_i32 = arith.constant 0 : i32
    %c0_i32_0 = arith.constant 0 : i32
    %c0_i32_1 = arith.constant 0 : i32
    return %c0_i32, %c0_i32_0 : i32, i32
  }
  func.func @transform_4(%arg0: i32) -> (i32, i32) {
    %c0_i32 = arith.constant 0 : i32
    %c0_i32_0 = arith.constant 0 : i32
    %c0_i32_1 = arith.constant 0 : i32
    return %c0_i32, %c0_i32_0 : i32, i32
  }
  func.func @transform_5(%arg0: i32) -> (i32, i32) {
    %c0_i32 = arith.constant 0 : i32
    %c0_i32_0 = arith.constant 0 : i32
    %c0_i32_1 = arith.constant 0 : i32
    return %c0_i32, %c0_i32_0 : i32, i32
  }
  func.func @transform_6(%arg0: i32) -> (i32, i32) {
    %c0_i32 = arith.constant 0 : i32
    %c0_i32_0 = arith.constant 0 : i32
    %c0_i32_1 = arith.constant 0 : i32
    return %c0_i32, %c0_i32_0 : i32, i32
  }
  func.func @transform_7(%arg0: i32) -> (i32, i32) {
    %c0_i32 = arith.constant 0 : i32
    %c0_i32_0 = arith.constant 0 : i32
    return %arg0, %c0_i32 : i32, i32
  }
  func.func @transform_8(%arg0: i32) -> (i32, i32) {
    %c0_i32 = arith.constant 0 : i32
    %c0_i32_0 = arith.constant 0 : i32
    return %arg0, %c0_i32 : i32, i32
  }
}

</mosaic_0001>

<bundles_post_ra>
// kernel: tpu_custom_call.1
= control target key start
LH: loop header
LB: loop body
LE: loop exit
PB: predicated region body
PF: predicated region fallthrough
CT: control target
= control target key end

     0   :  { %14 = vsyncpa [#allocation3], 0  ;;  %s1396_s0 = inlined_call_operand.hbm [shape: f32[8,32], index: 0, kind: input, shape index: {}]   ;;  %s1397_s1 = inlined_call_operand.hbm [shape: bf16[6,16,16], index: 1, kind: input, shape index: {}]   ;;  %s1398_s2 = inlined_call_operand.hbm [shape: bf16[6,16,16], index: 2, kind: input, shape index: {}]   ;;  %s1399_s3 = inlined_call_operand.hbm [shape: f32[6,16], index: 3, kind: input, shape index: {}]   ;;  %s1400_s4 = inlined_call_operand.hbm [shape: f32[6,16], index: 4, kind: input, shape index: {}]   ;;  %s1401_s5 = inlined_call_operand.vmem [shape: f32[1,32], index: 5, kind: input, shape index: {}]   ;;  %s1402_s6 = inlined_call_operand.vmem [shape: f32[1,32], index: 6, kind: input, shape index: {}]   ;;  %s1403_s7 = inlined_call_operand.hbm [shape: f32[8,32], index: 7, kind: output, shape index: {0}]   ;;  %s1404_s8 = inlined_call_operand.hbm [shape: f32[8,128], index: 8, kind: output, shape index: {1}]  }
   0x1   :  { %15 = vsyncpa [#allocation6], 0 }
   0x2   :  { %16 = vsyncpa [#allocation9], 0 }
   0x3   :  { %17 = vsyncpa [#allocation4], 0 }
   0x4   :  { %18 = vsyncpa [#allocation13], 0  ;;  %s1221_s27 = smov [#allocation5]  }
   0x5   :  { %s34_s28 = sshll.u32 %s1221_s27, 4  ;;  %s35_s28 = int_to_ptr.vmem [resolvable:$true] %s34_s28 }
   0x6   :  { %s1079_s29 = scalar_lea.vmem %s35_s28, 768  ;;  %p1084_p1 = scmp.lt.s32.totalorder %s35_s28, %s35_s28 }
   0x7   :  { %p1080_p0 = scmp.ne.s32.totalorder %s35_s28, %s1079_s29  ;;  %p1085_p2 = scmp.lt.s32.totalorder %s1079_s29, %s1079_s29 }
   0x9   :  { %p1086_p3 = por %p1085_p2, %p1084_p1 }
   0xb   :  { %p1087_p4 = pnand %p1086_p3, %p1080_p0 }
   0xd   :  { %1090 = shalt.err (!%p1087_p4)
}
   0xe   :  { %s1222_s30 = smov 64   ;;  %s1223_s9 = smov 4  }
   0xf   :  { %40 = dma.hbm_to_vmem [thread:$0]  %s1397_s1, 768, %s35_s28, [#allocation6], %s1222_s30, %s1222_s30, %s1223_s9  }
  0x10   :  { %s1224_s12 = smov [#allocation8]   ;;  %s1225_s14 = smov [#allocation2]  }
  0x11   :  { %s59_s13 = sshll.u32 %s1224_s12, 4  ;;  %s25_s15 = sshll.u32 %s1225_s14, 4  ;;  %s60_s13 = int_to_ptr.vmem [resolvable:$true] %s59_s13  ;;  %s26_s15 = int_to_ptr.vmem [resolvable:$true] %s25_s15 }
  0x12   :  { %s1099_s16 = scalar_lea.vmem %s60_s13, 128  ;;  %p1104_p6 = scmp.lt.s32.totalorder %s60_s13, %s60_s13 }
  0x13   :  { %p1100_p5 = scmp.ne.s32.totalorder %s60_s13, %s1099_s16  ;;  %p1105_p7 = scmp.lt.s32.totalorder %s1099_s16, %s1099_s16 }
  0x15   :  { %p1106_p8 = por %p1105_p7, %p1104_p6 }
  0x17   :  { %p1107_p9 = pnand %p1106_p8, %p1100_p5 }
  0x19   :  { %1110 = shalt.err (!%p1107_p9)
}
  0x1a   :  { %62 = dma.hbm_to_vmem [thread:$0]  %s1399_s3, 128, %s60_s13, [#allocation9]  }
  0x1b   :  { %s1119_s19 = scalar_lea.vmem %s26_s15, 128  ;;  %p1124_p11 = scmp.lt.s32.totalorder %s26_s15, %s26_s15 }
  0x1c   :  { %p1120_p10 = scmp.ne.s32.totalorder %s26_s15, %s1119_s19  ;;  %p1125_p12 = scmp.lt.s32.totalorder %s1119_s19, %s1119_s19 }
  0x1e   :  { %p1126_p13 = por %p1125_p12, %p1124_p11 }
  0x20   :  { %p1127_p0 = pnand %p1126_p13, %p1120_p10 }
  0x22   :  { %1130 = shalt.err (!%p1127_p0)
}
  0x23   :  { %28 = dma.hbm_to_vmem [thread:$0]  %s1396_s0, 128, %s26_s15, [#allocation3]  }
  0x24   :  { %s1226_s21 = smov [#allocation7]   ;;  %s1227_s23 = smov [#allocation10]  }
  0x25   :  { %s46_s22 = sshll.u32 %s1226_s21, 4  ;;  %s69_s24 = sshll.u32 %s1227_s23, 4  ;;  %s47_s22 = int_to_ptr.vmem [resolvable:$true] %s46_s22  ;;  %s70_s24 = int_to_ptr.vmem [resolvable:$true] %s69_s24 }
  0x26   :  { %s1139_s25 = scalar_lea.vmem %s47_s22, 768  ;;  %p1144_p2 = scmp.lt.s32.totalorder %s47_s22, %s47_s22 }
  0x27   :  { %p1140_p1 = scmp.ne.s32.totalorder %s47_s22, %s1139_s25  ;;  %p1145_p3 = scmp.lt.s32.totalorder %s1139_s25, %s1139_s25 }
  0x29   :  { %p1146_p4 = por %p1145_p3, %p1144_p2 }
  0x2b   :  { %p1147_p5 = pnand %p1146_p4, %p1140_p1 }
  0x2d   :  { %1150 = shalt.err (!%p1147_p5)
}
  0x2e   :  { %52 = dma.hbm_to_vmem [thread:$0]  %s1398_s2, 768, %s47_s22, [#allocation6], %s1222_s30, %s1222_s30, %s1223_s9  }
  0x2f   :  { %s1159_s0 = scalar_lea.vmem %s70_s24, 128  ;;  %p1164_p7 = scmp.lt.s32.totalorder %s70_s24, %s70_s24 }
  0x30   :  { %p1160_p6 = scmp.ne.s32.totalorder %s70_s24, %s1159_s0  ;;  %p1165_p8 = scmp.lt.s32.totalorder %s1159_s0, %s1159_s0 }
  0x32   :  { %p1166_p9 = por %p1165_p8, %p1164_p7 }
  0x34   :  { %p1167_p10 = pnand %p1166_p9, %p1160_p6 }
  0x36   :  { %1170 = shalt.err (!%p1167_p10)
}
  0x37   :  { %72 = dma.hbm_to_vmem [thread:$0]  %s1400_s4, 128, %s70_s24, [#allocation9]  }
  0x38   :  { %1211 = dma.done.wait [#allocation3], 128  }
  0x39   :  { %1212 = vsyncadd [#allocation3], 4294967168 }
  0x3a   :  { %1213 = dma.done.wait [#allocation6], 1536  }
  0x3b   :  { %1214 = vsyncadd [#allocation6], 4294965760 }
  0x3c   :  { %1215 = dma.done.wait [#allocation9], 256  }
  0x3d   :  { %1216 = vsyncadd [#allocation9], 4294967040  ;;  %v1228_v0 = vmov 0.0   ;;  %vm1229_vm0 = vmmov 0   ;;  %v1035_v1 = vld [vmem:[#allocation5] sm:$0xff]   ;;  %v1306_v2 = vld [vmem:[#allocation2] sm:$0xff] }
  0x3e   :  { %950 = vmatprep.subr.bf16.mxu0 %v1228_v0  ;;  %952 = vmatprep.mubr.msk.bf16.mxu0 %vm1229_vm0, %v1228_v0  ;;  %v94_v3 = vpack.c.bf16 %v1306_v2, %v1306_v2  ;;  %vm108_vm1 = vcmask 130048   ;;  %v1036_v4 = vld [vmem:[#allocation7] sm:$0xff]   ;;  %v888_v5 = vld [vmem:[#allocation8] ss:$0 sm:$0xff]  ;;  %v1037_v17 = vld [vmem:[#allocation5 + $0x8] sm:$0xff]   ;;  %s1230_s2 = smov 16  }
  0x3f   :  { %956 = vmatprep.subr.bf16.mxu1 %v1228_v0  ;;  %958 = vmatprep.mubr.msk.bf16.mxu1 %vm1229_vm0, %v1228_v0  ;;  %v1038_v18 = vld [vmem:[#allocation7 + $0x8] sm:$0xff]   ;;  %v891_v19 = vld [vmem:[#allocation10] ss:$0 sm:$0xff]  ;;  %s1231_s4 = smov 112   ;;  %v1039_v28 = vld [vmem:[#allocation5 + $0x10] sm:$0xff]   ;;  %s1232_s11 = smov [#allocation11]  }
  0x40   :  { %951 = vmatpush3.bf16.msra.mxu0 %v1035_v1  ;;  %957 = vmatpush3.bf16.msra.mxu1 %v1036_v4  ;;  %v1040_v29 = vld [vmem:[#allocation7 + $0x10] sm:$0xff]   ;;  %v897_v42 = vld [vmem:[#allocation10 + $0x1] ss:$0 sm:$0xff]  ;;  %v903_v49 = vld [vmem:[#allocation10 + $0x2] ss:$0 sm:$0xff]  ;;  %s863_s12 = sshll.u32 %s1232_s11, 4  ;;  %s864_s12 = int_to_ptr.vmem [resolvable:$true] %s863_s12 }
  0x41   :  { %962 = vmatprep.subr.bf16.mxu0 %v1228_v0  ;;  %968 = vmatprep.subr.bf16.mxu1 %v1228_v0  ;;  %v894_v30 = vld [vmem:[#allocation8 + $0x1] ss:$0 sm:$0xff]  ;;  %v900_v48 = vld [vmem:[#allocation8 + $0x2] ss:$0 sm:$0xff]  ;;  %v1041_v1 = vld [vmem:[#allocation5 + $0x18] sm:$0xff]   ;;  %vm851_vm2 = vcmask 261120   ;;  %p1176_p12 = scmp.lt.s32.totalorder %s864_s12, %s864_s12 }
  0x42   :  { %s1171_s13 = scalar_lea.vmem %s864_s12, 128 }
  0x43   :  { %953 = vmatmul.mubr.msk.bf16.vlgmr.msra.gmra.mxu0 %vm108_vm1, %v94_v3  ;;  %959 = vmatmul.mubr.msk.bf16.vlgmr.msra.gmra.mxu1 %vm108_vm1, %v94_v3  ;;  %p1172_p11 = scmp.ne.s32.totalorder %s864_s12, %s1171_s13  ;;  %p1177_p13 = scmp.lt.s32.totalorder %s1171_s13, %s1171_s13 }
  0x44   :  { %964 = vmatprep.mubr.msk.bf16.mxu0 %vm1229_vm0, %v1228_v0  ;;  %970 = vmatprep.mubr.msk.bf16.mxu1 %vm1229_vm0, %v1228_v0 }
  0x45   :  { %963 = vmatpush3.bf16.msra.mxu0 %v1037_v17  ;;  %969 = vmatpush3.bf16.msra.mxu1 %v1038_v18  ;;  %p1178_p0 = por %p1177_p13, %p1176_p12 }
  0x46   :  { %974 = vmatprep.subr.bf16.mxu0 %v1228_v0  ;;  %980 = vmatprep.subr.bf16.mxu1 %v1228_v0 }
  0x47   :  { %p1179_p1 = pnand %p1178_p0, %p1172_p11 }
 0x103   :  { %v146_v6 = vpop.f32.mrf.mxu0  ;;  %v200_v9 = vpop.f32.mrf.mxu1 }
 0x104   :  { %v147_v7 = vadd.f32 %v888_v5, %v146_v6  ;;  %v201_v21 = vadd.f32 %v891_v19, %v200_v9 }
 0x105   :  { %v954_v8 = vpop.f32.mrf.mxu0  ;;  %v960_v11 = vpop.f32.mrf.mxu1 }
 0x106   :  { %1047 = vtanh.f32 %v147_v7  ;;  %v1044_v11 = vld [vmem:[#allocation7 + $0x20] sm:$0xff]  }
 0x107   :  { %v149_v10 = vpop.f32.mrf.mxu0  ;;  %v203_v13 = vpop.f32.mrf.mxu1 }
 0x108   :  { %v1043_v10 = vld [vmem:[#allocation5 + $0x20] sm:$0xff]  }
 0x109   :  { %v955_v12 = vpop.f32.mrf.mxu0  ;;  %v961_v14 = vpop.f32.mrf.mxu1 }
 0x10a   :  { %v906_v12 = vld [vmem:[#allocation8 + $0x3] ss:$0 sm:$0xff] }
 0x113   :  { %v1318_v15 = vpop.eup %1047 }
 0x114   :  { %v206_v16 = vmul.f32 1.442695, %v1318_v15 }
 0x116   :  { %1049 = vpow2.f32 %v206_v16 }
 0x123   :  { %v1050_v20 = vpop.eup %1049 }
 0x124   :  { %209 = vrot.lane.b32.xlu0 %v1050_v20, %s1230_s2 }
 0x128   :  { %214 = vrot.lane.b32.xlu0 %v201_v21, %s1230_s2 }
 0x196   :  { %v210_v22 = vpop.permute.xlu0 %209 }
 0x197   :  { %v212_v23 = vmul.f32 %v210_v22, %v1306_v2 }
 0x19a   :  { %v215_v24 = vpop.permute.xlu0 %214 }
 0x19b   :  { %v1326_v25 = vadd.f32 %v215_v24, %v212_v23 }
 0x19d   :  { %v219_v26 = vpack.c.bf16 %v1326_v25, %v1326_v25 }
 0x19f   :  { %229 = vrot.lane.b32.xlu1 %v219_v26, %s1231_s4 }
 0x211   :  { %v230_v27 = vpop.permute.xlu1 %229 }
 0x212   :  { %965 = vmatmul.mubr.msk.bf16.vlgmr.msra.gmra.mxu0 %vm108_vm1, %v230_v27  ;;  %971 = vmatmul.mubr.msk.bf16.vlgmr.msra.gmra.mxu1 %vm108_vm1, %v230_v27 }
 0x213   :  { %976 = vmatprep.mubr.msk.bf16.mxu0 %vm1229_vm0, %v1228_v0  ;;  %982 = vmatprep.mubr.msk.bf16.mxu1 %vm1229_vm0, %v1228_v0 }
 0x214   :  { %975 = vmatpush3.bf16.msra.mxu0 %v1039_v28  ;;  %981 = vmatpush3.bf16.msra.mxu1 %v1040_v29 }
 0x215   :  { %986 = vmatprep.subr.bf16.mxu0 %v1228_v0  ;;  %992 = vmatprep.subr.bf16.mxu1 %v1228_v0 }
 0x2d2   :  { %v274_v31 = vpop.f32.mrf.mxu0  ;;  %v329_v32 = vpop.f32.mrf.mxu1 }
 0x2d3   :  { %v275_v33 = vadd.f32 %v894_v30, %v274_v31  ;;  %v330_v44 = vadd.f32 %v897_v42, %v329_v32  ;;  %v912_v31 = vld [vmem:[#allocation8 + $0x4] ss:$0 sm:$0xff]  ;;  %v915_v32 = vld [vmem:[#allocation10 + $0x4] ss:$0 sm:$0xff] }
 0x2d4   :  { %v966_v34 = vpop.f32.mrf.mxu0  ;;  %v972_v35 = vpop.f32.mrf.mxu1 }
 0x2d5   :  { %1051 = vtanh.f32 %v275_v33 }
 0x2d6   :  { %v277_v36 = vpop.f32.mrf.mxu0  ;;  %v332_v37 = vpop.f32.mrf.mxu1 }
 0x2d8   :  { %v967_v38 = vpop.f32.mrf.mxu0  ;;  %v973_v39 = vpop.f32.mrf.mxu1 }
 0x2e2   :  { %v1052_v40 = vpop.eup %1051 }
 0x2e3   :  { %v335_v41 = vmul.f32 1.442695, %v1052_v40  ;;  %v339_v60 = vadd.f32 %v1052_v40, %v1318_v15 }
 0x2e5   :  { %1053 = vpow2.f32 %v335_v41 }
 0x2f2   :  { %v1054_v43 = vpop.eup %1053 }
 0x2f3   :  { %v337_v45 = vmul.f32 %v1054_v43, %v1306_v2  ;;  %v1042_v2 = vld [vmem:[#allocation7 + $0x18] sm:$0xff]  }
 0x2f5   :  { %v1340_v46 = vadd.f32 %v337_v45, %v330_v44 }
 0x2f7   :  { %v340_v47 = vpack.c.bf16 %v1340_v46, %v1340_v46 }
 0x2f9   :  { %977 = vmatmul.mubr.msk.bf16.vlgmr.msra.gmra.mxu0 %vm108_vm1, %v340_v47  ;;  %983 = vmatmul.mubr.msk.bf16.vlgmr.msra.gmra.mxu1 %vm108_vm1, %v340_v47 }
 0x2fa   :  { %988 = vmatprep.mubr.msk.bf16.mxu0 %vm1229_vm0, %v1228_v0  ;;  %994 = vmatprep.mubr.msk.bf16.mxu1 %vm1229_vm0, %v1228_v0 }
 0x2fb   :  { %987 = vmatpush3.bf16.msra.mxu0 %v1041_v1  ;;  %993 = vmatpush3.bf16.msra.mxu1 %v1042_v2 }
 0x2fc   :  { %998 = vmatprep.subr.bf16.mxu0 %v1228_v0  ;;  %1004 = vmatprep.subr.bf16.mxu1 %v1228_v0 }
 0x3b9   :  { %v392_v50 = vpop.f32.mrf.mxu0  ;;  %v447_v51 = vpop.f32.mrf.mxu1 }
 0x3ba   :  { %v393_v52 = vadd.f32 %v900_v48, %v392_v50  ;;  %v448_v53 = vadd.f32 %v903_v49, %v447_v51 }
 0x3bb   :  { %v978_v54 = vpop.f32.mrf.mxu0  ;;  %v984_v55 = vpop.f32.mrf.mxu1 }
 0x3bc   :  { %1055 = vtanh.f32 %v393_v52  ;;  %461 = vrot.lane.b32.xlu0 %v448_v53, %s1230_s2  ;;  %v918_v54 = vld [vmem:[#allocation8 + $0x5] ss:$0 sm:$0xff] }
 0x3bd   :  { %v395_v56 = vpop.f32.mrf.mxu0  ;;  %v450_v57 = vpop.f32.mrf.mxu1 }
 0x3bf   :  { %v979_v58 = vpop.f32.mrf.mxu0  ;;  %v985_v59 = vpop.f32.mrf.mxu1 }
 0x3c9   :  { %v1056_v61 = vpop.eup %1055 }
 0x3ca   :  { %v453_v62 = vmul.f32 1.442695, %v1056_v61  ;;  %v465_v63 = vadd.f32 %v1056_v61, %v339_v60 }
 0x3cc   :  { %1057 = vpow2.f32 %v453_v62 }
 0x3d9   :  { %v1058_v3 = vpop.eup %1057 }
 0x3da   :  { %456 = vrot.lane.b32.xlu1 %v1058_v3, %s1230_s2 }
 0x42e   :  { %v462_v6 = vpop.permute.xlu0 %461 }
 0x44c   :  { %v457_v4 = vpop.permute.xlu1 %456 }
 0x44d   :  { %v459_v5 = vmul.f32 %v457_v4, %v1326_v25  ;;  %v909_v25 = vld [vmem:[#allocation10 + $0x3] ss:$0 sm:$0xff] }
 0x44f   :  { %v1356_v7 = vadd.f32 %v462_v6, %v459_v5  ;;  %v921_v5 = vld [vmem:[#allocation10 + $0x5] ss:$0 sm:$0xff] }
 0x451   :  { %v466_v8 = vpack.c.bf16 %v1356_v7, %v1356_v7 }
 0x453   :  { %476 = vrot.lane.b32.xlu1 %v466_v8, %s1231_s4 }
 0x4c5   :  { %v477_v9 = vpop.permute.xlu1 %476 }
 0x4c6   :  { %989 = vmatmul.mubr.msk.bf16.vlgmr.msra.gmra.mxu0 %vm108_vm1, %v477_v9  ;;  %995 = vmatmul.mubr.msk.bf16.vlgmr.msra.gmra.mxu1 %vm108_vm1, %v477_v9 }
 0x4c7   :  { %1000 = vmatprep.mubr.msk.bf16.mxu0 %vm1229_vm0, %v1228_v0  ;;  %1006 = vmatprep.mubr.msk.bf16.mxu1 %vm1229_vm0, %v1228_v0 }
 0x4c8   :  { %999 = vmatpush3.bf16.msra.mxu0 %v1043_v10  ;;  %1005 = vmatpush3.bf16.msra.mxu1 %v1044_v11  ;;  %v924_v10 = vld [vmem:[%s1402_s6] ss:$0 sm:$0xff] }
 0x4c9   :  { %1010 = vmatprep.subr.bf16.mxu0 %v1228_v0  ;;  %1016 = vmatprep.subr.bf16.mxu1 %v1228_v0 }
 0x586   :  { %v521_v13 = vpop.f32.mrf.mxu0  ;;  %v576_v14 = vpop.f32.mrf.mxu1 }
 0x587   :  { %v522_v15 = vadd.f32 %v906_v12, %v521_v13  ;;  %v577_v27 = vadd.f32 %v909_v25, %v576_v14  ;;  %v925_v12 = vld [vmem:[%s1401_s5] ss:$0 sm:$0xff] }
 0x588   :  { %v990_v16 = vpop.f32.mrf.mxu0  ;;  %v996_v17 = vpop.f32.mrf.mxu1 }
 0x589   :  { %1059 = vtanh.f32 %v522_v15 }
 0x58a   :  { %v524_v18 = vpop.f32.mrf.mxu0  ;;  %v579_v19 = vpop.f32.mrf.mxu1 }
 0x58c   :  { %v991_v20 = vpop.f32.mrf.mxu0  ;;  %v997_v21 = vpop.f32.mrf.mxu1 }
 0x596   :  { %v1060_v22 = vpop.eup %1059 }
 0x597   :  { %v582_v23 = vmul.f32 1.442695, %v1060_v22  ;;  %v586_v24 = vadd.f32 %v1060_v22, %v465_v63 }
 0x599   :  { %1061 = vpow2.f32 %v582_v23 }
 0x5a6   :  { %v1062_v26 = vpop.eup %1061 }
 0x5a7   :  { %v584_v28 = vmul.f32 %v1062_v26, %v1340_v46  ;;  %v1046_v46 = vld [vmem:[#allocation7 + $0x28] sm:$0xff]  }
 0x5a9   :  { %v585_v29 = vadd.f32 %v584_v28, %v577_v27 }
 0x5ab   :  { %v587_v30 = vpack.c.bf16 %v585_v29, %v585_v29 }
 0x5ad   :  { %1001 = vmatmul.mubr.msk.bf16.vlgmr.msra.gmra.mxu0 %vm108_vm1, %v587_v30  ;;  %1007 = vmatmul.mubr.msk.bf16.vlgmr.msra.gmra.mxu1 %vm108_vm1, %v587_v30 }
 0x5ae   :  { %1012 = vmatprep.mubr.msk.bf16.mxu0 %vm1229_vm0, %v1228_v0  ;;  %1018 = vmatprep.mubr.msk.bf16.mxu1 %vm1229_vm0, %v1228_v0  ;;  %v1045_v0 = vld [vmem:[#allocation5 + $0x28] sm:$0xff]  }
 0x5af   :  { %1011 = vmatpush3.bf16.msra.mxu0 %v1045_v0  ;;  %1017 = vmatpush3.bf16.msra.mxu1 %v1046_v46 }
 0x66d   :  { %v639_v33 = vpop.f32.mrf.mxu0  ;;  %v694_v34 = vpop.f32.mrf.mxu1 }
 0x66e   :  { %v640_v35 = vadd.f32 %v912_v31, %v639_v33  ;;  %v695_v36 = vadd.f32 %v915_v32, %v694_v34 }
 0x66f   :  { %v1002_v37 = vpop.f32.mrf.mxu0  ;;  %v1008_v38 = vpop.f32.mrf.mxu1 }
 0x670   :  { %1063 = vtanh.f32 %v640_v35  ;;  %708 = vrot.lane.b32.xlu1 %v695_v36, %s1230_s2 }
 0x671   :  { %v642_v39 = vpop.f32.mrf.mxu0  ;;  %v697_v40 = vpop.f32.mrf.mxu1 }
 0x673   :  { %v1003_v41 = vpop.f32.mrf.mxu0  ;;  %v1009_v42 = vpop.f32.mrf.mxu1 }
 0x67d   :  { %v1064_v43 = vpop.eup %1063 }
 0x67e   :  { %v700_v44 = vmul.f32 1.442695, %v1064_v43  ;;  %v712_v45 = vadd.f32 %v1064_v43, %v586_v24 }
 0x680   :  { %1065 = vpow2.f32 %v700_v44 }
 0x68d   :  { %v1066_v47 = vpop.eup %1065 }
 0x68e   :  { %703 = vrot.lane.b32.xlu0 %v1066_v47, %s1230_s2 }
 0x6e2   :  { %v709_v50 = vpop.permute.xlu1 %708 }
 0x700   :  { %v704_v48 = vpop.permute.xlu0 %703 }
 0x701   :  { %v706_v49 = vmul.f32 %v704_v48, %v1356_v7 }
 0x703   :  { %v711_v51 = vadd.f32 %v709_v50, %v706_v49 }
 0x705   :  { %v713_v52 = vpack.c.bf16 %v711_v51, %v711_v51 }
 0x707   :  { %723 = vrot.lane.b32.xlu0 %v713_v52, %s1231_s4 }
 0x779   :  { %v724_v53 = vpop.permute.xlu0 %723 }
 0x77a   :  { %1013 = vmatmul.mubr.msk.bf16.vlgmr.msra.gmra.mxu0 %vm108_vm1, %v724_v53  ;;  %1019 = vmatmul.mubr.msk.bf16.vlgmr.msra.gmra.mxu1 %vm108_vm1, %v724_v53 }
 0x83a   :  { %v768_v55 = vpop.f32.mrf.mxu0  ;;  %v823_v56 = vpop.f32.mrf.mxu1 }
 0x83b   :  { %v769_v57 = vadd.f32 %v918_v54, %v768_v55  ;;  %v824_v7 = vadd.f32 %v921_v5, %v823_v56 }
 0x83c   :  { %v1014_v58 = vpop.f32.mrf.mxu0  ;;  %v1020_v59 = vpop.f32.mrf.mxu1 }
 0x83d   :  { %1067 = vtanh.f32 %v769_v57 }
 0x83e   :  { %v771_v60 = vpop.f32.mrf.mxu0  ;;  %v826_v61 = vpop.f32.mrf.mxu1 }
 0x840   :  { %v1015_v62 = vpop.f32.mrf.mxu0  ;;  %v1021_v63 = vpop.f32.mrf.mxu1 }
 0x84a   :  { %v1068_v1 = vpop.eup %1067 }
 0x84b   :  { %v829_v2 = vmul.f32 1.442695, %v1068_v1  ;;  %v833_v3 = vadd.f32 %v1068_v1, %v712_v45 }
 0x84d   :  { %1069 = vpow2.f32 %v829_v2  ;;  %v853_v4 = vsel %vm108_vm1, %v833_v3, 0.0 }
 0x84e   :  { %854 = vadd.xlane.f32.xlu1 %v853_v4 }
 0x85a   :  { %v1070_v6 = vpop.eup %1069 }
 0x85b   :  { %v831_v8 = vmul.f32 %v1070_v6, %v585_v29 }
 0x85d   :  { %v832_v9 = vadd.f32 %v831_v8, %v824_v7 }
 0x85f   :  { %v834_v11 = vsel %vm108_vm1, %v832_v9, %v711_v51 }
 0x860   :  { %v842_v13 = vmul.f32 %v924_v10, %v834_v11 }
 0x862   :  { %v850_v14 = vadd.f32 %v925_v12, %v842_v13 }
 0x864   :  { %852 = vst.msk [vmem:[#allocation11] sm:$0xff] %vm851_vm2, %v850_v14 }
 0x865   :  { %1182 = shalt.err (!%p1179_p1)
}
 0x866   :  { %866 = dma.vmem_to_hbm [thread:$0]  %s864_s12, 128, %s1403_s7, [#allocation4]  }
 0x867   :  { %s1233_s15 = smov [#allocation12]  }
 0x868   :  { %s873_s5 = sshll.u32 %s1233_s15, 4  ;;  %s874_s5 = int_to_ptr.vmem [resolvable:$true] %s873_s5 }
 0x869   :  { %s1191_s16 = scalar_lea.vmem %s874_s5, 128  ;;  %p1196_p3 = scmp.lt.s32.totalorder %s874_s5, %s874_s5 }
 0x86a   :  { %p1192_p2 = scmp.ne.s32.totalorder %s874_s5, %s1191_s16  ;;  %p1197_p4 = scmp.lt.s32.totalorder %s1191_s16, %s1191_s16 }
 0x86c   :  { %p1198_p5 = por %p1197_p4, %p1196_p3 }
 0x86e   :  { %p1199_p6 = pnand %p1198_p5, %p1192_p2 }
 0x8d7   :  { %v855_v15 = vpop.xlane.xlu1 %854 }
 0x8d8   :  { %856 = vst [vmem:[#allocation12] sm:$0xff] %v855_v15 }
 0x8d9   :  { %1202 = shalt.err (!%p1199_p6)
}
 0x8da   :  { %876 = dma.vmem_to_hbm [thread:$0]  %s874_s5, 128, %s1404_s8, [#allocation13]  }
 0x8db   :  { %1217 = dma.done.wait [#allocation4], 128  }
 0x8dc   :  { %1218 = vsyncadd [#allocation4], 4294967168 }
 0x8dd   :  { %1219 = dma.done.wait [#allocation13], 128  }
 0x8de   :  { %1220 = vsyncadd [#allocation13], 4294967168 }
 0x8df   :  { %883 = vsyncpa [#allocation3], 1 }
 0x8e0   :  { %884 = vsyncpa [#allocation6], 1 }
 0x8e1   :  { %885 = vsyncpa [#allocation9], 1 }
 0x8e2   :  { %886 = vsyncpa [#allocation4], 1 }
 0x8e3   :  { %887 = vsyncpa [#allocation13], 1 }

</bundles_post_ra>
